<compile_context>
chip_gen: v7x
topology: tpu7x:2x2x1
jax: 0.10.0
libtpu: 0.0.40
codegen_flags: <defaults>
</compile_context>

<pallas_src>
import functools

import jax
import jax.numpy as jnp
from jax import lax
from jax.experimental import pallas as pl
from jax.experimental.pallas import tpu as pltpu


# ----------------------------------------------------------------------------
# helpers
# ----------------------------------------------------------------------------
def _round_up(n: int, m: int) -> int:
    return ((n + m - 1) // m) * m


def _choose_bm(M: int) -> int:
    """Batch tile: one block for small M, >=2 blocks (megacore) capped at 512 rows."""
    m8 = _round_up(max(M, 1), 8)
    if m8 <= 256:
        return m8
    return min(512, _round_up(pl.cdiv(m8, 2), 8))


# ----------------------------------------------------------------------------
# Fused MLP kernel: all layers in one body, activations stay in vregs/VMEM.
# ----------------------------------------------------------------------------
def _fused_mlp_kernel(*refs, n_layers, activation, softmax, out_valid, out_padded):
    # refs layout: x_ref, w0, b0, w1, b1, ..., w_{L-1}, b_{L-1}, o_ref
    x_ref = refs[0]
    o_ref = refs[-1]
    wb = refs[1:-1]

    h = x_ref[...].astype(jnp.float32)
    for i in range(n_layers):
        w = wb[2 * i][...]                   # bf16 (K_pad, N_pad), zero-padded rows
        b = wb[2 * i + 1][...]               # f32  (1, N_pad), broadcasts over rows
        # bf16 x bf16 matmul with f32 accumulation (MXU-native on v5e/v6e/v7x).
        h = jnp.dot(h.astype(jnp.bfloat16), w,
                    preferred_element_type=jnp.float32) + b
        if i < n_layers - 1:
            if activation == "relu":
                h = jnp.maximum(h, 0.0)
            elif activation == "tanh":
                h = jnp.tanh(h)
            elif activation == "sigmoid":
                h = jax.nn.sigmoid(h)
            else:
                raise ValueError(f"unsupported activation: {activation}")
            # Padded lanes may be non-zero here (e.g. sigmoid -> 0.5); this stays
            # exact because the NEXT layer's padded weight rows are zero (bf16 zero
            # padding is exact).

    if softmax:
        if out_valid != out_padded:
            # Mask padded logit lanes so they do not pollute the softmax denominator.
            col = lax.broadcasted_iota(jnp.int32, h.shape, dimension=1)
            h = jnp.where(col < out_valid, h, -jnp.inf)
        h = h - jnp.max(h, axis=-1, keepdims=True)
        e = jnp.exp(h)
        h = e * pl.reciprocal(jnp.sum(e, axis=-1, keepdims=True), approx=True)

    o_ref[...] = h.astype(o_ref.dtype)


# ----------------------------------------------------------------------------
# One-time parameter prep: pad features to 128 lanes, cast weights to bf16.
# ----------------------------------------------------------------------------
def prepare_params(params, weight_dtype=jnp.bfloat16):
    """params: list of (w, b) with w as (in_features, out_features).

    Returns (prepared, k0_pad, n_last_pad) where prepared is a list of
    (w_padded_bf16 (K_pad, N_pad), b_padded_f32 (1, N_pad)).
    """
    k0 = params[0][0].shape[0]
    k0_pad = _round_up(k0, 128)
    in_pad = k0_pad
    prepared = []
    for (w, b) in params:
        kin, kout = w.shape
        out_pad = _round_up(kout, 128)
        w_p = jnp.pad(w, ((0, in_pad - kin), (0, out_pad - kout))).astype(weight_dtype)
        b_p = jnp.pad(b.reshape(1, kout),
                      ((0, 0), (0, out_pad - kout))).astype(jnp.float32)
        prepared.append((w_p, b_p))
        in_pad = out_pad
    return prepared, k0_pad, in_pad


# ----------------------------------------------------------------------------
# Forward pass wrapper
# ----------------------------------------------------------------------------
def mlp_forward(x, prepared, k0_pad, n_last_pad, output_size,
                activation="ReLU", softmax=False):
    """Forward pass of MLP_Model as a single fused Pallas TPU kernel.

    x:        (batch, input_size) float array
    prepared: output of prepare_params (bf16 padded weights, f32 padded biases)
    """
    act = {"ReLU": "relu", "Tanh": "tanh", "Sigmoid": "sigmoid"}[activation]
    n_layers = len(prepared)
    M, K0 = x.shape
    assert K0 <= k0_pad

    bm = _choose_bm(M)
    m_pad = _round_up(M, bm)
    x_p = jnp.pad(x.astype(jnp.float32), ((0, m_pad - M), (0, k0_pad - K0)))

    flat_wb = []
    for (w_p, b_p) in prepared:
        flat_wb.extend([w_p, b_p])

    # ---- explicit VMEM budget ----------------------------------------------
    def _budget(weight_buf_count):
        wbytes = sum(w.size * w.dtype.itemsize + b.size * b.dtype.itemsize
                     for (w, b) in prepared) * weight_buf_count
        io_bytes = 2 * bm * (k0_pad + n_last_pad) * 4      # double-buffered x / out tiles
        max_n_pad = max(w.shape[1] for (w, _) in prepared)
        act_bytes = 2 * bm * max_n_pad * 4                 # live activation headroom
        return wbytes + io_bytes + act_bytes + (2 << 20)   # slack
    # TODO(synk): if the single-buffered bf16 budget still exceeds ~48 MiB (v7x),
    # stream weights per layer with pltpu.emit_pipeline instead of all-resident.

    kernel = functools.partial(
        _fused_mlp_kernel, n_layers=n_layers, activation=act,
        softmax=softmax, out_valid=output_size, out_padded=n_last_pad)

    y_p = None
    for single_buf in (True, False):
        try:
            wkw = dict(pipeline_mode=pl.Buffered(1)) if single_buf else {}
            in_specs = [pl.BlockSpec((bm, k0_pad), lambda i: (i, 0))]
            for (w_p, b_p) in prepared:
                in_specs.append(pl.BlockSpec(w_p.shape, lambda i: (0, 0), **wkw))
                in_specs.append(pl.BlockSpec(b_p.shape, lambda i: (0, 0), **wkw))
            out_spec = pl.BlockSpec((bm, n_last_pad), lambda i: (i, 0))

            vmem_limit = int(min(max(_budget(1 if single_buf else 2), 16 << 20),
                                 96 << 20))
            y_p = pl.pallas_call(
                kernel,
                out_shape=jax.ShapeDtypeStruct((m_pad, n_last_pad), jnp.float32),
                grid=(m_pad // bm,),
                in_specs=in_specs,
                out_specs=out_spec,
                compiler_params=pltpu.CompilerParams(
                    dimension_semantics=("parallel",),
                    vmem_limit_bytes=vmem_limit,
                ),
            )(x_p, *flat_wb)
            break
        except Exception:
            # Fallback: Buffered(1) unsupported by this JAX -> default double-buffering.
            if not single_buf:
                raise

    return y_p[:M, :output_size]


# ----------------------------------------------------------------------------
# Parameter init matching MLP_Model's layer shapes
# ----------------------------------------------------------------------------
def init_mlp_params(key, input_size, hidden_layer, hidden_size, output_size,
                    dtype=jnp.float32):
    """Weights stored as (in_features, out_features); U(-1/sqrt(fan_in), ...)."""
    dims = [input_size] + [hidden_size] * (hidden_layer + 1) + [output_size]
    params = []
    for i in range(len(dims) - 1):
        fan_in, fan_out = dims[i], dims[i + 1]
        key, kw, kb = jax.random.split(key, 3)
        bound = 1.0 / jnp.sqrt(fan_in)
        w = jax.random.uniform(kw, (fan_in, fan_out), dtype, -bound, bound)
        b = jax.random.uniform(kb, (fan_out,), dtype, -bound, bound)
        params.append((w, b))
    return params


# Pure-JAX f32 reference for sanity checking.
def mlp_forward_ref(x, params, activation="ReLU", softmax=False):
    act_fn = {"ReLU": lambda v: jnp.maximum(v, 0.0),
              "Tanh": jnp.tanh,
              "Sigmoid": jax.nn.sigmoid}[activation]
    n_layers = len(params)
    h = x
    for i, (w, b) in enumerate(params):
        h = h @ w + b
        if i < n_layers - 1:
            h = act_fn(h)
    if softmax:
        h = jax.nn.softmax(h, axis=-1)
    return h


if __name__ == "__main__":
    # Small tabular-data shapes consistent with the module's forward.
    batch = 8
    input_size = 32
    hidden_layer = 2
    hidden_size = 32
    output_size = 4
    activation = "ReLU"

    key = jax.random.PRNGKey(0)
    key, kx = jax.random.split(key)
    x = jax.random.normal(kx, (batch, input_size), dtype=jnp.float32)

    params = init_mlp_params(key, input_size, hidden_layer, hidden_size,
                             output_size)

    # One-time weight prep (zero-pad to 128 lanes, cast to bf16).
    prepared, k0_pad, n_last_pad = prepare_params(params)

    # Classification head (softmax) path.
    out_sm = mlp_forward(x, prepared, k0_pad, n_last_pad, output_size,
                         activation=activation, softmax=True)
    out_sm = jax.block_until_ready(out_sm)
    ref_sm = mlp_forward_ref(x, params, activation=activation, softmax=True)
    assert out_sm.shape == (batch, output_size)
    # bf16 matmuls + approx reciprocal in the softmax denominator -> relaxed tol.
    assert jnp.allclose(out_sm, ref_sm, atol=3e-2, rtol=3e-2), "softmax mismatch"

    # Raw-logit (regression-style) path.
    out_lg = mlp_forward(x, prepared, k0_pad, n_last_pad, output_size,
                         activation=activation, softmax=False)
    out_lg = jax.block_until_ready(out_lg)
    ref_lg = mlp_forward_ref(x, params, activation=activation, softmax=False)
    assert out_lg.shape == (batch, output_size)
    assert jnp.allclose(out_lg, ref_lg, atol=5e-2, rtol=5e-2), "logit mismatch"

    print("KERNEL_OK")
</pallas_src>

<mosaic_0001>
module attributes {stable_mosaic.version = 11 : i64} {
  func.func @_fused_mlp_kernel(%arg0: i32, %arg1: memref<8x128xf32, #tpu.memory_space<vmem>>, %arg2: memref<128x128xbf16, #tpu.memory_space<vmem>>, %arg3: memref<1x128xf32, #tpu.memory_space<vmem>>, %arg4: memref<128x128xbf16, #tpu.memory_space<vmem>>, %arg5: memref<1x128xf32, #tpu.memory_space<vmem>>, %arg6: memref<128x128xbf16, #tpu.memory_space<vmem>>, %arg7: memref<1x128xf32, #tpu.memory_space<vmem>>, %arg8: memref<128x128xbf16, #tpu.memory_space<vmem>>, %arg9: memref<1x128xf32, #tpu.memory_space<vmem>>, %arg10: memref<8x128xf32, #tpu.memory_space<vmem>>) attributes {dimension_semantics = [#tpu.dimension_semantics<parallel>], iteration_bounds = array<i64: 1>, scalar_prefetch = 0 : i64, scratch_operands = 0 : i64, tpu.core_type = #tpu.core_type<tc>, window_params = [{transform_indices = @transform_0, window_bounds = array<i64: 8, 128>}, {pipeline_mode = #tpu.pipeline_mode<synchronous>, transform_indices = @transform_1, window_bounds = array<i64: 128, 128>}, {pipeline_mode = #tpu.pipeline_mode<synchronous>, transform_indices = @transform_2, window_bounds = array<i64: 1, 128>}, {pipeline_mode = #tpu.pipeline_mode<synchronous>, transform_indices = @transform_3, window_bounds = array<i64: 128, 128>}, {pipeline_mode = #tpu.pipeline_mode<synchronous>, transform_indices = @transform_4, window_bounds = array<i64: 1, 128>}, {pipeline_mode = #tpu.pipeline_mode<synchronous>, transform_indices = @transform_5, window_bounds = array<i64: 128, 128>}, {pipeline_mode = #tpu.pipeline_mode<synchronous>, transform_indices = @transform_6, window_bounds = array<i64: 1, 128>}, {pipeline_mode = #tpu.pipeline_mode<synchronous>, transform_indices = @transform_7, window_bounds = array<i64: 128, 128>}, {pipeline_mode = #tpu.pipeline_mode<synchronous>, transform_indices = @transform_8, window_bounds = array<i64: 1, 128>}, {transform_indices = @transform_9, window_bounds = array<i64: 8, 128>}]} {
    %c0 = arith.constant 0 : index
    %c0_0 = arith.constant 0 : index
    %0 = vector.load %arg1[%c0, %c0_0] : memref<8x128xf32, #tpu.memory_space<vmem>>, vector<8x128xf32>
    %c0_1 = arith.constant 0 : index
    %c0_2 = arith.constant 0 : index
    %1 = vector.load %arg2[%c0_1, %c0_2] : memref<128x128xbf16, #tpu.memory_space<vmem>>, vector<128x128xbf16>
    %c0_3 = arith.constant 0 : index
    %c0_4 = arith.constant 0 : index
    %2 = vector.load %arg3[%c0_3, %c0_4] : memref<1x128xf32, #tpu.memory_space<vmem>>, vector<1x128xf32>
    %3 = arith.truncf %0 : vector<8x128xf32> to vector<8x128xbf16>
    %cst = arith.constant dense<0.000000e+00> : vector<8x128xf32>
    %4 = tpu.matmul %3, %1, %cst {dimension_numbers = #tpu.dot_dimension_numbers<[1], [0], [0], [1], [0, 0, 1, 1], [], []>} : vector<8x128xbf16>, vector<128x128xbf16>, vector<8x128xf32> -> vector<8x128xf32>
    %5 = vector.broadcast %2 : vector<1x128xf32> to vector<8x128xf32>
    %6 = arith.addf %4, %5 : vector<8x128xf32>
    %cst_5 = arith.constant 0.000000e+00 : f32
    %7 = vector.broadcast %cst_5 : f32 to vector<8x128xf32>
    %8 = arith.maximumf %6, %7 : vector<8x128xf32>
    %c0_6 = arith.constant 0 : index
    %c0_7 = arith.constant 0 : index
    %9 = vector.load %arg4[%c0_6, %c0_7] : memref<128x128xbf16, #tpu.memory_space<vmem>>, vector<128x128xbf16>
    %c0_8 = arith.constant 0 : index
    %c0_9 = arith.constant 0 : index
    %10 = vector.load %arg5[%c0_8, %c0_9] : memref<1x128xf32, #tpu.memory_space<vmem>>, vector<1x128xf32>
    %11 = arith.truncf %8 : vector<8x128xf32> to vector<8x128xbf16>
    %cst_10 = arith.constant dense<0.000000e+00> : vector<8x128xf32>
    %12 = tpu.matmul %11, %9, %cst_10 {dimension_numbers = #tpu.dot_dimension_numbers<[1], [0], [0], [1], [0, 0, 1, 1], [], []>} : vector<8x128xbf16>, vector<128x128xbf16>, vector<8x128xf32> -> vector<8x128xf32>
    %13 = vector.broadcast %10 : vector<1x128xf32> to vector<8x128xf32>
    %14 = arith.addf %12, %13 : vector<8x128xf32>
    %cst_11 = arith.constant 0.000000e+00 : f32
    %15 = vector.broadcast %cst_11 : f32 to vector<8x128xf32>
    %16 = arith.maximumf %14, %15 : vector<8x128xf32>
    %c0_12 = arith.constant 0 : index
    %c0_13 = arith.constant 0 : index
    %17 = vector.load %arg6[%c0_12, %c0_13] : memref<128x128xbf16, #tpu.memory_space<vmem>>, vector<128x128xbf16>
    %c0_14 = arith.constant 0 : index
    %c0_15 = arith.constant 0 : index
    %18 = vector.load %arg7[%c0_14, %c0_15] : memref<1x128xf32, #tpu.memory_space<vmem>>, vector<1x128xf32>
    %19 = arith.truncf %16 : vector<8x128xf32> to vector<8x128xbf16>
    %cst_16 = arith.constant dense<0.000000e+00> : vector<8x128xf32>
    %20 = tpu.matmul %19, %17, %cst_16 {dimension_numbers = #tpu.dot_dimension_numbers<[1], [0], [0], [1], [0, 0, 1, 1], [], []>} : vector<8x128xbf16>, vector<128x128xbf16>, vector<8x128xf32> -> vector<8x128xf32>
    %21 = vector.broadcast %18 : vector<1x128xf32> to vector<8x128xf32>
    %22 = arith.addf %20, %21 : vector<8x128xf32>
    %cst_17 = arith.constant 0.000000e+00 : f32
    %23 = vector.broadcast %cst_17 : f32 to vector<8x128xf32>
    %24 = arith.maximumf %22, %23 : vector<8x128xf32>
    %c0_18 = arith.constant 0 : index
    %c0_19 = arith.constant 0 : index
    %25 = vector.load %arg8[%c0_18, %c0_19] : memref<128x128xbf16, #tpu.memory_space<vmem>>, vector<128x128xbf16>
    %c0_20 = arith.constant 0 : index
    %c0_21 = arith.constant 0 : index
    %26 = vector.load %arg9[%c0_20, %c0_21] : memref<1x128xf32, #tpu.memory_space<vmem>>, vector<1x128xf32>
    %27 = arith.truncf %24 : vector<8x128xf32> to vector<8x128xbf16>
    %cst_22 = arith.constant dense<0.000000e+00> : vector<8x128xf32>
    %28 = tpu.matmul %27, %25, %cst_22 {dimension_numbers = #tpu.dot_dimension_numbers<[1], [0], [0], [1], [0, 0, 1, 1], [], []>} : vector<8x128xbf16>, vector<128x128xbf16>, vector<8x128xf32> -> vector<8x128xf32>
    %29 = vector.broadcast %26 : vector<1x128xf32> to vector<8x128xf32>
    %30 = arith.addf %28, %29 : vector<8x128xf32>
    %31 = tpu.iota {dimensions = array<i32: 1>} : vector<8x128xi32>
    %c4_i32 = arith.constant 4 : i32
    %32 = vector.broadcast %c4_i32 : i32 to vector<8x128xi32>
    %33 = arith.cmpi slt, %31, %32 : vector<8x128xi32>
    %cst_23 = arith.constant 0xFF800000 : f32
    %34 = vector.broadcast %cst_23 : f32 to vector<8x128xf32>
    %35 = arith.select %33, %30, %34 : vector<8x128xi1>, vector<8x128xf32>
    %cst_24 = arith.constant dense<0xFF800000> : vector<8xf32>
    %36 = vector.multi_reduction <maximumf>, %35, %cst_24 [1] : vector<8x128xf32> to vector<8xf32>
    %37 = vector.shape_cast %36 : vector<8xf32> to vector<8x1xf32>
    %38 = vector.broadcast %37 : vector<8x1xf32> to vector<8x128xf32>
    %39 = arith.subf %35, %38 : vector<8x128xf32>
    %40 = math.exp %39 : vector<8x128xf32>
    %cst_25 = arith.constant dense<0.000000e+00> : vector<8xf32>
    %41 = vector.multi_reduction <add>, %40, %cst_25 [1] : vector<8x128xf32> to vector<8xf32>
    %42 = vector.shape_cast %41 : vector<8xf32> to vector<8x1xf32>
    %43 = tpu.reciprocal %42 {approx = true} : vector<8x1xf32> -> vector<8x1xf32>
    %44 = vector.broadcast %43 : vector<8x1xf32> to vector<8x128xf32>
    %45 = arith.mulf %40, %44 : vector<8x128xf32>
    %c0_26 = arith.constant 0 : index
    %c0_27 = arith.constant 0 : index
    %46 = vector.load %arg10[%c0_26, %c0_27] : memref<8x128xf32, #tpu.memory_space<vmem>>, vector<8x128xf32>
    tpu.vector_store %arg10[%c0_26, %c0_27], %45 {strides = array<i32>} : memref<8x128xf32, #tpu.memory_space<vmem>>, vector<8x128xf32>,
    return
  }
  func.func @transform_0(%arg0: i32) -> (i32, i32) {
    %c0_i32 = arith.constant 0 : i32
    %c0_i32_0 = arith.constant 0 : i32
    return %arg0, %c0_i32 : i32, i32
  }
  func.func @transform_1(%arg0: i32) -> (i32, i32) {
    %c0_i32 = arith.constant 0 : i32
    %c0_i32_0 = arith.constant 0 : i32
    %c0_i32_1 = arith.constant 0 : i32
    return %c0_i32, %c0_i32_0 : i32, i32
  }
  func.func @transform_2(%arg0: i32) -> (i32, i32) {
    %c0_i32 = arith.constant 0 : i32
    %c0_i32_0 = arith.constant 0 : i32
    %c0_i32_1 = arith.constant 0 : i32
    return %c0_i32, %c0_i32_0 : i32, i32
  }
  func.func @transform_3(%arg0: i32) -> (i32, i32) {
    %c0_i32 = arith.constant 0 : i32
    %c0_i32_0 = arith.constant 0 : i32
    %c0_i32_1 = arith.constant 0 : i32
    return %c0_i32, %c0_i32_0 : i32, i32
  }
  func.func @transform_4(%arg0: i32) -> (i32, i32) {
    %c0_i32 = arith.constant 0 : i32
    %c0_i32_0 = arith.constant 0 : i32
    %c0_i32_1 = arith.constant 0 : i32
    return %c0_i32, %c0_i32_0 : i32, i32
  }
  func.func @transform_5(%arg0: i32) -> (i32, i32) {
    %c0_i32 = arith.constant 0 : i32
    %c0_i32_0 = arith.constant 0 : i32
    %c0_i32_1 = arith.constant 0 : i32
    return %c0_i32, %c0_i32_0 : i32, i32
  }
  func.func @transform_6(%arg0: i32) -> (i32, i32) {
    %c0_i32 = arith.constant 0 : i32
    %c0_i32_0 = arith.constant 0 : i32
    %c0_i32_1 = arith.constant 0 : i32
    return %c0_i32, %c0_i32_0 : i32, i32
  }
  func.func @transform_7(%arg0: i32) -> (i32, i32) {
    %c0_i32 = arith.constant 0 : i32
    %c0_i32_0 = arith.constant 0 : i32
    %c0_i32_1 = arith.constant 0 : i32
    return %c0_i32, %c0_i32_0 : i32, i32
  }
  func.func @transform_8(%arg0: i32) -> (i32, i32) {
    %c0_i32 = arith.constant 0 : i32
    %c0_i32_0 = arith.constant 0 : i32
    %c0_i32_1 = arith.constant 0 : i32
    return %c0_i32, %c0_i32_0 : i32, i32
  }
  func.func @transform_9(%arg0: i32) -> (i32, i32) {
    %c0_i32 = arith.constant 0 : i32
    %c0_i32_0 = arith.constant 0 : i32
    return %arg0, %c0_i32 : i32, i32
  }
}

module attributes {stable_mosaic.version = 11 : i64} {
  func.func @_fused_mlp_kernel(%arg0: i32, %arg1: memref<8x128xf32, #tpu.memory_space<vmem>>, %arg2: memref<128x128xbf16, #tpu.memory_space<vmem>>, %arg3: memref<1x128xf32, #tpu.memory_space<vmem>>, %arg4: memref<128x128xbf16, #tpu.memory_space<vmem>>, %arg5: memref<1x128xf32, #tpu.memory_space<vmem>>, %arg6: memref<128x128xbf16, #tpu.memory_space<vmem>>, %arg7: memref<1x128xf32, #tpu.memory_space<vmem>>, %arg8: memref<128x128xbf16, #tpu.memory_space<vmem>>, %arg9: memref<1x128xf32, #tpu.memory_space<vmem>>, %arg10: memref<8x128xf32, #tpu.memory_space<vmem>>) attributes {dimension_semantics = [#tpu.dimension_semantics<parallel>], iteration_bounds = array<i64: 1>, scalar_prefetch = 0 : i64, scratch_operands = 0 : i64, tpu.core_type = #tpu.core_type<tc>, window_params = [{transform_indices = @transform_0, window_bounds = array<i64: 8, 128>}, {pipeline_mode = #tpu.pipeline_mode<synchronous>, transform_indices = @transform_1, window_bounds = array<i64: 128, 128>}, {pipeline_mode = #tpu.pipeline_mode<synchronous>, transform_indices = @transform_2, window_bounds = array<i64: 1, 128>}, {pipeline_mode = #tpu.pipeline_mode<synchronous>, transform_indices = @transform_3, window_bounds = array<i64: 128, 128>}, {pipeline_mode = #tpu.pipeline_mode<synchronous>, transform_indices = @transform_4, window_bounds = array<i64: 1, 128>}, {pipeline_mode = #tpu.pipeline_mode<synchronous>, transform_indices = @transform_5, window_bounds = array<i64: 128, 128>}, {pipeline_mode = #tpu.pipeline_mode<synchronous>, transform_indices = @transform_6, window_bounds = array<i64: 1, 128>}, {pipeline_mode = #tpu.pipeline_mode<synchronous>, transform_indices = @transform_7, window_bounds = array<i64: 128, 128>}, {pipeline_mode = #tpu.pipeline_mode<synchronous>, transform_indices = @transform_8, window_bounds = array<i64: 1, 128>}, {transform_indices = @transform_9, window_bounds = array<i64: 8, 128>}]} {
    %c0 = arith.constant 0 : index
    %c0_0 = arith.constant 0 : index
    %0 = vector.load %arg1[%c0, %c0_0] : memref<8x128xf32, #tpu.memory_space<vmem>>, vector<8x128xf32>
    %c0_1 = arith.constant 0 : index
    %c0_2 = arith.constant 0 : index
    %1 = vector.load %arg2[%c0_1, %c0_2] : memref<128x128xbf16, #tpu.memory_space<vmem>>, vector<128x128xbf16>
    %c0_3 = arith.constant 0 : index
    %c0_4 = arith.constant 0 : index
    %2 = vector.load %arg3[%c0_3, %c0_4] : memref<1x128xf32, #tpu.memory_space<vmem>>, vector<1x128xf32>
    %3 = arith.truncf %0 : vector<8x128xf32> to vector<8x128xbf16>
    %cst = arith.constant dense<0.000000e+00> : vector<8x128xf32>
    %4 = tpu.matmul %3, %1, %cst {dimension_numbers = #tpu.dot_dimension_numbers<[1], [0], [0], [1], [0, 0, 1, 1], [], []>} : vector<8x128xbf16>, vector<128x128xbf16>, vector<8x128xf32> -> vector<8x128xf32>
    %5 = vector.broadcast %2 : vector<1x128xf32> to vector<8x128xf32>
    %6 = arith.addf %4, %5 : vector<8x128xf32>
    %cst_5 = arith.constant 0.000000e+00 : f32
    %7 = vector.broadcast %cst_5 : f32 to vector<8x128xf32>
    %8 = arith.maximumf %6, %7 : vector<8x128xf32>
    %c0_6 = arith.constant 0 : index
    %c0_7 = arith.constant 0 : index
    %9 = vector.load %arg4[%c0_6, %c0_7] : memref<128x128xbf16, #tpu.memory_space<vmem>>, vector<128x128xbf16>
    %c0_8 = arith.constant 0 : index
    %c0_9 = arith.constant 0 : index
    %10 = vector.load %arg5[%c0_8, %c0_9] : memref<1x128xf32, #tpu.memory_space<vmem>>, vector<1x128xf32>
    %11 = arith.truncf %8 : vector<8x128xf32> to vector<8x128xbf16>
    %cst_10 = arith.constant dense<0.000000e+00> : vector<8x128xf32>
    %12 = tpu.matmul %11, %9, %cst_10 {dimension_numbers = #tpu.dot_dimension_numbers<[1], [0], [0], [1], [0, 0, 1, 1], [], []>} : vector<8x128xbf16>, vector<128x128xbf16>, vector<8x128xf32> -> vector<8x128xf32>
    %13 = vector.broadcast %10 : vector<1x128xf32> to vector<8x128xf32>
    %14 = arith.addf %12, %13 : vector<8x128xf32>
    %cst_11 = arith.constant 0.000000e+00 : f32
    %15 = vector.broadcast %cst_11 : f32 to vector<8x128xf32>
    %16 = arith.maximumf %14, %15 : vector<8x128xf32>
    %c0_12 = arith.constant 0 : index
    %c0_13 = arith.constant 0 : index
    %17 = vector.load %arg6[%c0_12, %c0_13] : memref<128x128xbf16, #tpu.memory_space<vmem>>, vector<128x128xbf16>
    %c0_14 = arith.constant 0 : index
    %c0_15 = arith.constant 0 : index
    %18 = vector.load %arg7[%c0_14, %c0_15] : memref<1x128xf32, #tpu.memory_space<vmem>>, vector<1x128xf32>
    %19 = arith.truncf %16 : vector<8x128xf32> to vector<8x128xbf16>
    %cst_16 = arith.constant dense<0.000000e+00> : vector<8x128xf32>
    %20 = tpu.matmul %19, %17, %cst_16 {dimension_numbers = #tpu.dot_dimension_numbers<[1], [0], [0], [1], [0, 0, 1, 1], [], []>} : vector<8x128xbf16>, vector<128x128xbf16>, vector<8x128xf32> -> vector<8x128xf32>
    %21 = vector.broadcast %18 : vector<1x128xf32> to vector<8x128xf32>
    %22 = arith.addf %20, %21 : vector<8x128xf32>
    %cst_17 = arith.constant 0.000000e+00 : f32
    %23 = vector.broadcast %cst_17 : f32 to vector<8x128xf32>
    %24 = arith.maximumf %22, %23 : vector<8x128xf32>
    %c0_18 = arith.constant 0 : index
    %c0_19 = arith.constant 0 : index
    %25 = vector.load %arg8[%c0_18, %c0_19] : memref<128x128xbf16, #tpu.memory_space<vmem>>, vector<128x128xbf16>
    %c0_20 = arith.constant 0 : index
    %c0_21 = arith.constant 0 : index
    %26 = vector.load %arg9[%c0_20, %c0_21] : memref<1x128xf32, #tpu.memory_space<vmem>>, vector<1x128xf32>
    %27 = arith.truncf %24 : vector<8x128xf32> to vector<8x128xbf16>
    %cst_22 = arith.constant dense<0.000000e+00> : vector<8x128xf32>
    %28 = tpu.matmul %27, %25, %cst_22 {dimension_numbers = #tpu.dot_dimension_numbers<[1], [0], [0], [1], [0, 0, 1, 1], [], []>} : vector<8x128xbf16>, vector<128x128xbf16>, vector<8x128xf32> -> vector<8x128xf32>
    %29 = vector.broadcast %26 : vector<1x128xf32> to vector<8x128xf32>
    %30 = arith.addf %28, %29 : vector<8x128xf32>
    %31 = tpu.iota {dimensions = array<i32: 1>} : vector<8x128xi32>
    %c4_i32 = arith.constant 4 : i32
    %32 = vector.broadcast %c4_i32 : i32 to vector<8x128xi32>
    %33 = arith.cmpi slt, %31, %32 : vector<8x128xi32>
    %cst_23 = arith.constant 0xFF800000 : f32
    %34 = vector.broadcast %cst_23 : f32 to vector<8x128xf32>
    %35 = arith.select %33, %30, %34 : vector<8x128xi1>, vector<8x128xf32>
    %cst_24 = arith.constant dense<0xFF800000> : vector<8xf32>
    %36 = vector.multi_reduction <maximumf>, %35, %cst_24 [1] : vector<8x128xf32> to vector<8xf32>
    %37 = vector.shape_cast %36 : vector<8xf32> to vector<8x1xf32>
    %38 = vector.broadcast %37 : vector<8x1xf32> to vector<8x128xf32>
    %39 = arith.subf %35, %38 : vector<8x128xf32>
    %40 = math.exp %39 : vector<8x128xf32>
    %cst_25 = arith.constant dense<0.000000e+00> : vector<8xf32>
    %41 = vector.multi_reduction <add>, %40, %cst_25 [1] : vector<8x128xf32> to vector<8xf32>
    %42 = vector.shape_cast %41 : vector<8xf32> to vector<8x1xf32>
    %43 = tpu.reciprocal %42 {approx = true} : vector<8x1xf32> -> vector<8x1xf32>
    %44 = vector.broadcast %43 : vector<8x1xf32> to vector<8x128xf32>
    %45 = arith.mulf %40, %44 : vector<8x128xf32>
    %c0_26 = arith.constant 0 : index
    %c0_27 = arith.constant 0 : index
    %46 = vector.load %arg10[%c0_26, %c0_27] : memref<8x128xf32, #tpu.memory_space<vmem>>, vector<8x128xf32>
    tpu.vector_store %arg10[%c0_26, %c0_27], %45 {strides = array<i32>} : memref<8x128xf32, #tpu.memory_space<vmem>>, vector<8x128xf32>,
    return
  }
  func.func @transform_0(%arg0: i32) -> (i32, i32) {
    %c0_i32 = arith.constant 0 : i32
    %c0_i32_0 = arith.constant 0 : i32
    return %arg0, %c0_i32 : i32, i32
  }
  func.func @transform_1(%arg0: i32) -> (i32, i32) {
    %c0_i32 = arith.constant 0 : i32
    %c0_i32_0 = arith.constant 0 : i32
    %c0_i32_1 = arith.constant 0 : i32
    return %c0_i32, %c0_i32_0 : i32, i32
  }
  func.func @transform_2(%arg0: i32) -> (i32, i32) {
    %c0_i32 = arith.constant 0 : i32
    %c0_i32_0 = arith.constant 0 : i32
    %c0_i32_1 = arith.constant 0 : i32
    return %c0_i32, %c0_i32_0 : i32, i32
  }
  func.func @transform_3(%arg0: i32) -> (i32, i32) {
    %c0_i32 = arith.constant 0 : i32
    %c0_i32_0 = arith.constant 0 : i32
    %c0_i32_1 = arith.constant 0 : i32
    return %c0_i32, %c0_i32_0 : i32, i32
  }
  func.func @transform_4(%arg0: i32) -> (i32, i32) {
    %c0_i32 = arith.constant 0 : i32
    %c0_i32_0 = arith.constant 0 : i32
    %c0_i32_1 = arith.constant 0 : i32
    return %c0_i32, %c0_i32_0 : i32, i32
  }
  func.func @transform_5(%arg0: i32) -> (i32, i32) {
    %c0_i32 = arith.constant 0 : i32
    %c0_i32_0 = arith.constant 0 : i32
    %c0_i32_1 = arith.constant 0 : i32
    return %c0_i32, %c0_i32_0 : i32, i32
  }
  func.func @transform_6(%arg0: i32) -> (i32, i32) {
    %c0_i32 = arith.constant 0 : i32
    %c0_i32_0 = arith.constant 0 : i32
    %c0_i32_1 = arith.constant 0 : i32
    return %c0_i32, %c0_i32_0 : i32, i32
  }
  func.func @transform_7(%arg0: i32) -> (i32, i32) {
    %c0_i32 = arith.constant 0 : i32
    %c0_i32_0 = arith.constant 0 : i32
    %c0_i32_1 = arith.constant 0 : i32
    return %c0_i32, %c0_i32_0 : i32, i32
  }
  func.func @transform_8(%arg0: i32) -> (i32, i32) {
    %c0_i32 = arith.constant 0 : i32
    %c0_i32_0 = arith.constant 0 : i32
    %c0_i32_1 = arith.constant 0 : i32
    return %c0_i32, %c0_i32_0 : i32, i32
  }
  func.func @transform_9(%arg0: i32) -> (i32, i32) {
    %c0_i32 = arith.constant 0 : i32
    %c0_i32_0 = arith.constant 0 : i32
    return %arg0, %c0_i32 : i32, i32
  }
}

</mosaic_0001>

<bundles_post_ra>
// kernel: tpu_custom_call.1
= control target key start
LH: loop header
LB: loop body
LE: loop exit
PB: predicated region body
PF: predicated region fallthrough
CT: control target
= control target key end

     0   :  { %14 = vsyncpa [#allocation3], 0  ;;  %s1117_s0 = inlined_call_operand.hbm [shape: f32[8,128], index: 0, kind: input, shape index: {}]   ;;  %s1118_s1 = inlined_call_operand.hbm [shape: bf16[128,128], index: 1, kind: input, shape index: {}]   ;;  %s1119_s2 = inlined_call_operand.vmem [shape: f32[1,128], index: 2, kind: input, shape index: {}]   ;;  %s1120_s3 = inlined_call_operand.hbm [shape: bf16[128,128], index: 3, kind: input, shape index: {}]   ;;  %s1121_s4 = inlined_call_operand.vmem [shape: f32[1,128], index: 4, kind: input, shape index: {}]   ;;  %s1122_s5 = inlined_call_operand.hbm [shape: bf16[128,128], index: 5, kind: input, shape index: {}]   ;;  %s1123_s6 = inlined_call_operand.vmem [shape: f32[1,128], index: 6, kind: input, shape index: {}]   ;;  %s1124_s7 = inlined_call_operand.hbm [shape: bf16[128,128], index: 7, kind: input, shape index: {}]   ;;  %s1125_s8 = inlined_call_operand.vmem [shape: f32[1,128], index: 8, kind: input, shape index: {}]   ;;  %s1126_s9 = inlined_call_operand.hbm [shape: f32[8,128], index: 9, kind: output, shape index: {}]  }
   0x1   :  { %15 = vsyncpa [#allocation6], 0 }
   0x2   :  { %16 = vsyncpa [#allocation9], 0 }
   0x3   :  { %17 = vsyncpa [#allocation4], 0  ;;  %s921_s30 = smov [#allocation5]   ;;  %s781_s13 = scalar_lea.hbm %s1118_s1, 1024 }
   0x4   :  { %s33_s10 = sshll.u32 %s921_s30, 4  ;;  %p782_p0 = scmp.ne.s32.totalorder %s1118_s1, %s781_s13  ;;  %s34_s10 = int_to_ptr.vmem [resolvable:$true] %s33_s10 }
   0x5   :  { %p785_p1 = scmp.lt.u32.totalorder %s781_s13, %s1118_s1 }
   0x7   :  { %p787_p2 = pnand %p785_p1, %p782_p0 }
   0x9   :  { %790 = shalt.err (!%p787_p2)
}
   0xa   :  { %s791_s18 = scalar_lea.vmem %s34_s10, 1024  ;;  %p796_p4 = scmp.lt.s32.totalorder %s34_s10, %s34_s10 }
   0xb   :  { %p792_p3 = scmp.ne.s32.totalorder %s34_s10, %s791_s18  ;;  %p797_p5 = scmp.lt.s32.totalorder %s791_s18, %s791_s18 }
   0xd   :  { %p798_p6 = por %p797_p5, %p796_p4 }
   0xf   :  { %p799_p7 = pnand %p798_p6, %p792_p3 }
  0x11   :  { %802 = shalt.err (!%p799_p7)
}
  0x12   :  { %s922_s19 = smov 64   ;;  %s923_s20 = smov 4  }
  0x13   :  { %39 = dma.hbm_to_vmem [thread:$0]  %s1118_s1, 1024, %s34_s10, [#allocation6], %s922_s19, %s922_s19, %s923_s20  }
  0x14   :  { %s924_s23 = smov [#allocation8]   ;;  %s925_s25 = smov [#allocation2]  }
  0x15   :  { %s61_s24 = sshll.u32 %s924_s23, 4  ;;  %s24_s26 = sshll.u32 %s925_s25, 4  ;;  %s62_s24 = int_to_ptr.vmem [resolvable:$true] %s61_s24  ;;  %s25_s26 = int_to_ptr.vmem [resolvable:$true] %s24_s26 }
  0x16   :  { %s803_s29 = scalar_lea.hbm %s1122_s5, 1024 }
  0x17   :  { %p804_p8 = scmp.ne.s32.totalorder %s1122_s5, %s803_s29  ;;  %p807_p9 = scmp.lt.u32.totalorder %s803_s29, %s1122_s5 }
  0x19   :  { %p809_p10 = pnand %p807_p9, %p804_p8 }
  0x1b   :  { %812 = shalt.err (!%p809_p10)
}
  0x1c   :  { %s813_s1 = scalar_lea.vmem %s62_s24, 1024  ;;  %p818_p12 = scmp.lt.s32.totalorder %s62_s24, %s62_s24 }
  0x1d   :  { %p814_p11 = scmp.ne.s32.totalorder %s62_s24, %s813_s1  ;;  %p819_p13 = scmp.lt.s32.totalorder %s813_s1, %s813_s1 }
  0x1f   :  { %p820_p0 = por %p819_p13, %p818_p12 }
  0x21   :  { %p821_p1 = pnand %p820_p0, %p814_p11 }
  0x23   :  { %824 = shalt.err (!%p821_p1)
}
  0x24   :  { %67 = dma.hbm_to_vmem [thread:$0]  %s1122_s5, 1024, %s62_s24, [#allocation9], %s922_s19, %s922_s19, %s923_s20  }
  0x25   :  { %s825_s17 = scalar_lea.hbm %s1117_s0, 128 }
  0x26   :  { %p826_p2 = scmp.ne.s32.totalorder %s1117_s0, %s825_s17  ;;  %p829_p3 = scmp.lt.u32.totalorder %s825_s17, %s1117_s0 }
  0x28   :  { %p831_p4 = pnand %p829_p3, %p826_p2 }
  0x2a   :  { %834 = shalt.err (!%p831_p4)
}
  0x2b   :  { %s835_s25 = scalar_lea.vmem %s25_s26, 128  ;;  %p840_p6 = scmp.lt.s32.totalorder %s25_s26, %s25_s26 }
  0x2c   :  { %p836_p5 = scmp.ne.s32.totalorder %s25_s26, %s835_s25  ;;  %p841_p7 = scmp.lt.s32.totalorder %s835_s25, %s835_s25 }
  0x2e   :  { %p842_p8 = por %p841_p7, %p840_p6 }
  0x30   :  { %p843_p9 = pnand %p842_p8, %p836_p5 }
  0x32   :  { %846 = shalt.err (!%p843_p9)
}
  0x33   :  { %27 = dma.hbm_to_vmem [thread:$0]  %s1117_s0, 128, %s25_s26, [#allocation3]  }
  0x34   :  { %s926_s27 = smov [#allocation7]   ;;  %s927_s29 = smov [#allocation10]  }
  0x35   :  { %s47_s28 = sshll.u32 %s926_s27, 4  ;;  %s75_s30 = sshll.u32 %s927_s29, 4  ;;  %s48_s28 = int_to_ptr.vmem [resolvable:$true] %s47_s28  ;;  %s76_s30 = int_to_ptr.vmem [resolvable:$true] %s75_s30 }
  0x36   :  { %s847_s13 = scalar_lea.hbm %s1120_s3, 1024 }
  0x37   :  { %p848_p10 = scmp.ne.s32.totalorder %s1120_s3, %s847_s13  ;;  %p851_p11 = scmp.lt.u32.totalorder %s847_s13, %s1120_s3 }
  0x39   :  { %p853_p12 = pnand %p851_p11, %p848_p10 }
  0x3b   :  { %856 = shalt.err (!%p853_p12)
}
  0x3c   :  { %s857_s0 = scalar_lea.vmem %s48_s28, 1024  ;;  %p862_p0 = scmp.lt.s32.totalorder %s48_s28, %s48_s28 }
  0x3d   :  { %p858_p13 = scmp.ne.s32.totalorder %s48_s28, %s857_s0  ;;  %p863_p1 = scmp.lt.s32.totalorder %s857_s0, %s857_s0 }
  0x3f   :  { %p864_p2 = por %p863_p1, %p862_p0 }
  0x41   :  { %p865_p3 = pnand %p864_p2, %p858_p13 }
  0x43   :  { %868 = shalt.err (!%p865_p3)
}
  0x44   :  { %53 = dma.hbm_to_vmem [thread:$0]  %s1120_s3, 1024, %s48_s28, [#allocation6], %s922_s19, %s922_s19, %s923_s20  }
  0x45   :  { %s869_s21 = scalar_lea.hbm %s1124_s7, 1024 }
  0x46   :  { %p870_p4 = scmp.ne.s32.totalorder %s1124_s7, %s869_s21  ;;  %p873_p5 = scmp.lt.u32.totalorder %s869_s21, %s1124_s7 }
  0x48   :  { %p875_p6 = pnand %p873_p5, %p870_p4 }
  0x4a   :  { %878 = shalt.err (!%p875_p6)
}
  0x4b   :  { %s879_s24 = scalar_lea.vmem %s76_s30, 1024  ;;  %p884_p8 = scmp.lt.s32.totalorder %s76_s30, %s76_s30 }
  0x4c   :  { %p880_p7 = scmp.ne.s32.totalorder %s76_s30, %s879_s24  ;;  %p885_p9 = scmp.lt.s32.totalorder %s879_s24, %s879_s24 }
  0x4e   :  { %p886_p10 = por %p885_p9, %p884_p8 }
  0x50   :  { %p887_p11 = pnand %p886_p10, %p880_p7 }
  0x52   :  { %890 = shalt.err (!%p887_p11)
}
  0x53   :  { %81 = dma.hbm_to_vmem [thread:$0]  %s1124_s7, 1024, %s76_s30, [#allocation9], %s922_s19, %s922_s19, %s923_s20  }
  0x54   :  { %913 = dma.done.wait [#allocation3], 128  }
  0x55   :  { %914 = vsyncadd [#allocation3], 4294967168 }
  0x56   :  { %915 = dma.done.wait [#allocation6], 2048  }
  0x57   :  { %916 = vsyncadd [#allocation6], 4294965248 }
  0x58   :  { %917 = dma.done.wait [#allocation9], 2048  }
  0x59   :  { %918 = vsyncadd [#allocation9], 4294965248  ;;  %v928_v0 = vmov 0.0   ;;  %vm929_vm0 = vmmov 0   ;;  %v745_v1 = vld [vmem:[#allocation5] sm:$0xff]   ;;  %v746_v2 = vld [vmem:[#allocation5 + $0x8] sm:$0xff]   ;;  %v552_v59 = vlaneseq }
  0x5a   :  { %655 = vmatprep.subr.bf16.mxu0 %v928_v0  ;;  %671 = vmatprep.mubr.msk.bf16.mxu0 %vm929_vm0, %v928_v0  ;;  %v747_v3 = vld [vmem:[#allocation5 + $0x10] sm:$0xff]   ;;  %v753_v4 = vld [vmem:[#allocation7] sm:$0xff]   ;;  %v748_v5 = vld [vmem:[#allocation5 + $0x18] sm:$0xff]  }
  0x5b   :  { %675 = vmatprep.subr.bf16.mxu1 %v928_v0  ;;  %691 = vmatprep.mubr.msk.bf16.mxu1 %vm929_vm0, %v928_v0  ;;  %v754_v6 = vld [vmem:[#allocation7 + $0x8] sm:$0xff]   ;;  %v749_v7 = vld [vmem:[#allocation5 + $0x20] sm:$0xff]   ;;  %v755_v8 = vld [vmem:[#allocation7 + $0x10] sm:$0xff]   ;;  %v553_v60 = vand.u32 127, %v552_v59 }
  0x5c   :  { %656 = vmatpush3.bf16.msra.mxu0 %v745_v1  ;;  %676 = vmatpush3.bf16.msra.mxu1 %v753_v4  ;;  %v750_v9 = vld [vmem:[#allocation5 + $0x28] sm:$0xff]   ;;  %v756_v10 = vld [vmem:[#allocation7 + $0x18] sm:$0xff]   ;;  %v751_v11 = vld [vmem:[#allocation5 + $0x30] sm:$0xff]  }
  0x5d   :  { %657 = vmatprep.subr.bf16.mxu0 %v928_v0  ;;  %677 = vmatprep.subr.bf16.mxu1 %v928_v0  ;;  %v757_v12 = vld [vmem:[#allocation7 + $0x20] sm:$0xff]   ;;  %v752_v13 = vld [vmem:[#allocation5 + $0x38] sm:$0xff]   ;;  %v758_v15 = vld [vmem:[#allocation7 + $0x28] sm:$0xff]   ;;  %vm554_vm1 = vcmp.lt.s32.totalorder %v553_v60, 4 }
  0x5e   :  { %v100_v14 = vld [vmem:[#allocation2] sm:$0xff]  ;;  %v759_v17 = vld [vmem:[#allocation7 + $0x30] sm:$0xff]   ;;  %v761_v19 = vld [vmem:[#allocation8] sm:$0xff]  }
  0x5f   :  { %v118_v16 = vpack.c.bf16 %v100_v14, %v100_v14  ;;  %v760_v18 = vld [vmem:[#allocation7 + $0x38] sm:$0xff]   ;;  %v762_v20 = vld [vmem:[#allocation8 + $0x8] sm:$0xff]   ;;  %v763_v21 = vld [vmem:[#allocation8 + $0x10] sm:$0xff]  }
  0x60   :  { %658 = vmatpush3.bf16.msra.mxu0 %v746_v2  ;;  %678 = vmatpush3.bf16.msra.mxu1 %v754_v6  ;;  %v764_v22 = vld [vmem:[#allocation8 + $0x18] sm:$0xff]   ;;  %v765_v23 = vld [vmem:[#allocation8 + $0x20] sm:$0xff]   ;;  %v766_v24 = vld [vmem:[#allocation8 + $0x28] sm:$0xff]  }
  0x61   :  { %659 = vmatprep.subr.bf16.mxu0 %v928_v0  ;;  %679 = vmatprep.subr.bf16.mxu1 %v928_v0  ;;  %v583_v25 = vld [vmem:[%s1119_s2] ss:$0 sm:$0xff]  ;;  %v767_v33 = vld [vmem:[#allocation8 + $0x30] sm:$0xff]   ;;  %v769_v35 = vld [vmem:[#allocation10] sm:$0xff]  }
  0x62   :  { %v768_v34 = vld [vmem:[#allocation8 + $0x38] sm:$0xff]   ;;  %v770_v36 = vld [vmem:[#allocation10 + $0x8] sm:$0xff]   ;;  %v771_v37 = vld [vmem:[#allocation10 + $0x10] sm:$0xff]  }
  0x63   :  { %v772_v38 = vld [vmem:[#allocation10 + $0x18] sm:$0xff]   ;;  %v773_v39 = vld [vmem:[#allocation10 + $0x20] sm:$0xff]   ;;  %v774_v40 = vld [vmem:[#allocation10 + $0x28] sm:$0xff]  }
  0x64   :  { %660 = vmatpush3.bf16.msra.mxu0 %v747_v3  ;;  %680 = vmatpush3.bf16.msra.mxu1 %v755_v8  ;;  %v592_v41 = vld [vmem:[%s1121_s4] ss:$0 sm:$0xff]  ;;  %v775_v49 = vld [vmem:[#allocation10 + $0x30] sm:$0xff]  }
  0x65   :  { %661 = vmatprep.subr.bf16.mxu0 %v928_v0  ;;  %681 = vmatprep.subr.bf16.mxu1 %v928_v0  ;;  %v776_v50 = vld [vmem:[#allocation10 + $0x38] sm:$0xff]  }
  0x66   :  { %v601_v51 = vld [vmem:[%s1123_s6] ss:$0 sm:$0xff]  ;;  %s930_s6 = smov [#allocation11]  }
  0x67   :  { %v610_v61 = vld [vmem:[%s1125_s8] ss:$0 sm:$0xff]  ;;  %s572_s11 = sshll.u32 %s930_s6, 4  ;;  %s573_s11 = int_to_ptr.vmem [resolvable:$true] %s572_s11 }
  0x68   :  { %662 = vmatpush3.bf16.msra.mxu0 %v748_v5  ;;  %682 = vmatpush3.bf16.msra.mxu1 %v756_v10  ;;  %s891_s8 = scalar_lea.vmem %s573_s11, 128  ;;  %p896_p13 = scmp.lt.s32.totalorder %s573_s11, %s573_s11 }
  0x69   :  { %663 = vmatprep.subr.bf16.mxu0 %v928_v0  ;;  %683 = vmatprep.subr.bf16.mxu1 %v928_v0  ;;  %p892_p12 = scmp.ne.s32.totalorder %s573_s11, %s891_s8  ;;  %p897_p0 = scmp.lt.s32.totalorder %s891_s8, %s891_s8 }
  0x6b   :  { %p898_p1 = por %p897_p0, %p896_p13 }
  0x6c   :  { %664 = vmatpush3.bf16.msra.mxu0 %v749_v7  ;;  %684 = vmatpush3.bf16.msra.mxu1 %v757_v12 }
  0x6d   :  { %665 = vmatprep.subr.bf16.mxu0 %v928_v0  ;;  %685 = vmatprep.subr.bf16.mxu1 %v928_v0  ;;  %p899_p2 = pnand %p898_p1, %p892_p12 }
  0x70   :  { %666 = vmatpush3.bf16.msra.mxu0 %v750_v9  ;;  %686 = vmatpush3.bf16.msra.mxu1 %v758_v15 }
  0x71   :  { %667 = vmatprep.subr.bf16.mxu0 %v928_v0  ;;  %687 = vmatprep.subr.bf16.mxu1 %v928_v0 }
  0x74   :  { %668 = vmatpush3.bf16.msra.mxu0 %v751_v11  ;;  %688 = vmatpush3.bf16.msra.mxu1 %v759_v17 }
  0x75   :  { %669 = vmatprep.subr.bf16.mxu0 %v928_v0  ;;  %689 = vmatprep.subr.bf16.mxu1 %v928_v0 }
  0x78   :  { %670 = vmatpush3.bf16.msra.mxu0 %v752_v13  ;;  %690 = vmatpush3.bf16.msra.mxu1 %v760_v18 }
  0x79   :  { %695 = vmatprep.subr.bf16.mxu0 %v928_v0  ;;  %715 = vmatprep.subr.bf16.mxu1 %v928_v0 }
  0x7b   :  { %672 = vmatmul.mubr.bf16.vlgmr.msra.gmra.mrb[0].mxu0 %v118_v16 }
  0x7c   :  { %711 = vmatprep.mubr.msk.bf16.mxu0 %vm929_vm0, %v928_v0  ;;  %696 = vmatpush3.bf16.msra.mxu0 %v761_v19 }
  0x7d   :  { %697 = vmatprep.subr.bf16.mxu0 %v928_v0 }
  0x80   :  { %698 = vmatpush3.bf16.msra.mxu0 %v762_v20 }
  0x81   :  { %699 = vmatprep.subr.bf16.mxu0 %v928_v0 }
  0x84   :  { %700 = vmatpush3.bf16.msra.mxu0 %v763_v21 }
  0x85   :  { %701 = vmatprep.subr.bf16.mxu0 %v928_v0 }
  0x88   :  { %702 = vmatpush3.bf16.msra.mxu0 %v764_v22 }
  0x89   :  { %703 = vmatprep.subr.bf16.mxu0 %v928_v0 }
  0x8c   :  { %704 = vmatpush3.bf16.msra.mxu0 %v765_v23 }
  0x8d   :  { %705 = vmatprep.subr.bf16.mxu0 %v928_v0 }
  0x90   :  { %706 = vmatpush3.bf16.msra.mxu0 %v766_v24 }
  0x91   :  { %707 = vmatprep.subr.bf16.mxu0 %v928_v0 }
  0x94   :  { %708 = vmatpush3.bf16.msra.mxu0 %v767_v33 }
  0x95   :  { %709 = vmatprep.subr.bf16.mxu0 %v928_v0 }
  0x98   :  { %710 = vmatpush3.bf16.msra.mxu0 %v768_v34 }
 0x14e   :  { %v207_v26 = vpop.f32.mrb[0].mxu0 }
 0x14f   :  { %v208_v27 = vadd.f32 %v583_v25, %v207_v26  ;;  %v673_v28 = vpop.f32.mrb[1].mxu0 }
 0x150   :  { %v210_v29 = vpop.f32.mrb[2].mxu0 }
 0x151   :  { %v213_v30 = vmax.f32 %v208_v27, 0.0  ;;  %v674_v31 = vpop.f32.mrb[3].mxu0 }
 0x153   :  { %v231_v32 = vpack.c.bf16 %v213_v30, %v213_v30 }
 0x155   :  { %692 = vmatmul.mubr.bf16.vlgmr.msra.gmra.mrb[0].mxu1 %v231_v32 }
 0x156   :  { %731 = vmatprep.mubr.msk.bf16.mxu1 %vm929_vm0, %v928_v0  ;;  %716 = vmatpush3.bf16.msra.mxu1 %v769_v35 }
 0x157   :  { %717 = vmatprep.subr.bf16.mxu1 %v928_v0 }
 0x15a   :  { %718 = vmatpush3.bf16.msra.mxu1 %v770_v36 }
 0x15b   :  { %719 = vmatprep.subr.bf16.mxu1 %v928_v0 }
 0x15e   :  { %720 = vmatpush3.bf16.msra.mxu1 %v771_v37 }
 0x15f   :  { %721 = vmatprep.subr.bf16.mxu1 %v928_v0 }
 0x162   :  { %722 = vmatpush3.bf16.msra.mxu1 %v772_v38 }
 0x163   :  { %723 = vmatprep.subr.bf16.mxu1 %v928_v0 }
 0x166   :  { %724 = vmatpush3.bf16.msra.mxu1 %v773_v39 }
 0x167   :  { %725 = vmatprep.subr.bf16.mxu1 %v928_v0 }
 0x16a   :  { %726 = vmatpush3.bf16.msra.mxu1 %v774_v40 }
 0x16b   :  { %727 = vmatprep.subr.bf16.mxu1 %v928_v0 }
 0x16e   :  { %728 = vmatpush3.bf16.msra.mxu1 %v775_v49 }
 0x16f   :  { %729 = vmatprep.subr.bf16.mxu1 %v928_v0 }
 0x172   :  { %730 = vmatpush3.bf16.msra.mxu1 %v776_v50 }
 0x228   :  { %v320_v42 = vpop.f32.mrb[0].mxu1 }
 0x229   :  { %v321_v43 = vadd.f32 %v592_v41, %v320_v42  ;;  %v693_v44 = vpop.f32.mrb[1].mxu1 }
 0x22a   :  { %v323_v45 = vpop.f32.mrb[2].mxu1 }
 0x22b   :  { %v326_v46 = vmax.f32 %v321_v43, 0.0  ;;  %v694_v47 = vpop.f32.mrb[3].mxu1 }
 0x22d   :  { %v344_v48 = vpack.c.bf16 %v326_v46, %v326_v46 }
 0x22f   :  { %712 = vmatmul.mubr.bf16.vlgmr.msra.gmra.mrb[4].mxu0 %v344_v48 }
 0x302   :  { %v433_v52 = vpop.f32.mrb[4].mxu0 }
 0x303   :  { %v434_v53 = vadd.f32 %v601_v51, %v433_v52  ;;  %v713_v54 = vpop.f32.mrb[5].mxu0 }
 0x304   :  { %v436_v55 = vpop.f32.mrb[6].mxu0 }
 0x305   :  { %v439_v56 = vmax.f32 %v434_v53, 0.0  ;;  %v714_v57 = vpop.f32.mrb[7].mxu0 }
 0x307   :  { %v457_v58 = vpack.c.bf16 %v439_v56, %v439_v56 }
 0x309   :  { %732 = vmatmul.mubr.bf16.vlgmr.msra.gmra.mrb[4].mxu1 %v457_v58 }
 0x3dc   :  { %v546_v62 = vpop.f32.mrb[4].mxu1 }
 0x3dd   :  { %v547_v63 = vadd.f32 %v610_v61, %v546_v62  ;;  %v733_v0 = vpop.f32.mrb[5].mxu1 }
 0x3de   :  { %v549_v1 = vpop.f32.mrb[6].mxu1 }
 0x3df   :  { %v734_v2 = vpop.f32.mrb[7].mxu1  ;;  %v555_v3 = vsel %vm554_vm1, %v547_v63, -inf }
 0x3e0   :  { %556 = vmax.xlane.f32.xlu0 %v555_v3 }
 0x46d   :  { %v557_v4 = vpop.xlane.xlu0 %556 }
 0x46e   :  { %v558_v5 = vsub.f32 %v555_v3, %v557_v4 }
 0x470   :  { %v559_v6 = vmul.f32 1.442695, %v558_v5 }
 0x472   :  { %777 = vpow2.f32 %v559_v6 }
 0x47c   :  { %v778_v7 = vpop.eup %777 }
 0x47d   :  { %561 = vadd.xlane.f32.xlu0 %v778_v7 }
 0x50a   :  { %v562_v8 = vpop.xlane.xlu0 %561 }
 0x50b   :  { %779 = vrcp.f32 %v562_v8 }
 0x515   :  { %v780_v9 = vpop.eup %779 }
 0x516   :  { %v564_v10 = vmul.f32 %v780_v9, %v778_v7 }
 0x518   :  { %565 = vst [vmem:[#allocation11] sm:$0xff] %v564_v10 }
 0x519   :  { %902 = shalt.err (!%p899_p2)
}
 0x51a   :  { %s903_s1 = scalar_lea.hbm %s1126_s9, 128 }
 0x51b   :  { %p904_p3 = scmp.ne.s32.totalorder %s1126_s9, %s903_s1  ;;  %p907_p4 = scmp.lt.u32.totalorder %s903_s1, %s1126_s9 }
 0x51d   :  { %p909_p5 = pnand %p907_p4, %p904_p3 }
 0x51f   :  { %912 = shalt.err (!%p909_p5)
}
 0x520   :  { %575 = dma.vmem_to_hbm [thread:$0]  %s573_s11, 128, %s1126_s9, [#allocation4]  }
 0x521   :  { %919 = dma.done.wait [#allocation4], 128  }
 0x522   :  { %920 = vsyncadd [#allocation4], 4294967168 }
 0x523   :  { %579 = vsyncpa [#allocation3], 1 }
 0x524   :  { %580 = vsyncpa [#allocation6], 1 }
 0x525   :  { %581 = vsyncpa [#allocation9], 1 }
 0x526   :  { %582 = vsyncpa [#allocation4], 1 }

// kernel: tpu_custom_call.1
= control target key start
LH: loop header
LB: loop body
LE: loop exit
PB: predicated region body
PF: predicated region fallthrough
CT: control target
= control target key end

     0   :  { %14 = vsyncpa [#allocation3], 0  ;;  %s1117_s0 = inlined_call_operand.hbm [shape: f32[8,128], index: 0, kind: input, shape index: {}]   ;;  %s1118_s1 = inlined_call_operand.hbm [shape: bf16[128,128], index: 1, kind: input, shape index: {}]   ;;  %s1119_s2 = inlined_call_operand.vmem [shape: f32[1,128], index: 2, kind: input, shape index: {}]   ;;  %s1120_s3 = inlined_call_operand.hbm [shape: bf16[128,128], index: 3, kind: input, shape index: {}]   ;;  %s1121_s4 = inlined_call_operand.vmem [shape: f32[1,128], index: 4, kind: input, shape index: {}]   ;;  %s1122_s5 = inlined_call_operand.hbm [shape: bf16[128,128], index: 5, kind: input, shape index: {}]   ;;  %s1123_s6 = inlined_call_operand.vmem [shape: f32[1,128], index: 6, kind: input, shape index: {}]   ;;  %s1124_s7 = inlined_call_operand.hbm [shape: bf16[128,128], index: 7, kind: input, shape index: {}]   ;;  %s1125_s8 = inlined_call_operand.vmem [shape: f32[1,128], index: 8, kind: input, shape index: {}]   ;;  %s1126_s9 = inlined_call_operand.hbm [shape: f32[8,128], index: 9, kind: output, shape index: {}]  }
   0x1   :  { %15 = vsyncpa [#allocation6], 0 }
   0x2   :  { %16 = vsyncpa [#allocation9], 0 }
   0x3   :  { %17 = vsyncpa [#allocation4], 0  ;;  %s921_s30 = smov [#allocation5]   ;;  %s781_s13 = scalar_lea.hbm %s1118_s1, 1024 }
   0x4   :  { %s33_s10 = sshll.u32 %s921_s30, 4  ;;  %p782_p0 = scmp.ne.s32.totalorder %s1118_s1, %s781_s13  ;;  %s34_s10 = int_to_ptr.vmem [resolvable:$true] %s33_s10 }
   0x5   :  { %p785_p1 = scmp.lt.u32.totalorder %s781_s13, %s1118_s1 }
   0x7   :  { %p787_p2 = pnand %p785_p1, %p782_p0 }
   0x9   :  { %790 = shalt.err (!%p787_p2)
}
   0xa   :  { %s791_s18 = scalar_lea.vmem %s34_s10, 1024  ;;  %p796_p4 = scmp.lt.s32.totalorder %s34_s10, %s34_s10 }
   0xb   :  { %p792_p3 = scmp.ne.s32.totalorder %s34_s10, %s791_s18  ;;  %p797_p5 = scmp.lt.s32.totalorder %s791_s18, %s791_s18 }
   0xd   :  { %p798_p6 = por %p797_p5, %p796_p4 }
   0xf   :  { %p799_p7 = pnand %p798_p6, %p792_p3 }
  0x11   :  { %802 = shalt.err (!%p799_p7)
}
  0x12   :  { %s922_s19 = smov 64   ;;  %s923_s20 = smov 4  }
  0x13   :  { %39 = dma.hbm_to_vmem [thread:$0]  %s1118_s1, 1024, %s34_s10, [#allocation6], %s922_s19, %s922_s19, %s923_s20  }
  0x14   :  { %s924_s23 = smov [#allocation8]   ;;  %s925_s25 = smov [#allocation2]  }
  0x15   :  { %s61_s24 = sshll.u32 %s924_s23, 4  ;;  %s24_s26 = sshll.u32 %s925_s25, 4  ;;  %s62_s24 = int_to_ptr.vmem [resolvable:$true] %s61_s24  ;;  %s25_s26 = int_to_ptr.vmem [resolvable:$true] %s24_s26 }
  0x16   :  { %s803_s29 = scalar_lea.hbm %s1122_s5, 1024 }
  0x17   :  { %p804_p8 = scmp.ne.s32.totalorder %s1122_s5, %s803_s29  ;;  %p807_p9 = scmp.lt.u32.totalorder %s803_s29, %s1122_s5 }
  0x19   :  { %p809_p10 = pnand %p807_p9, %p804_p8 }
  0x1b   :  { %812 = shalt.err (!%p809_p10)
}
  0x1c   :  { %s813_s1 = scalar_lea.vmem %s62_s24, 1024  ;;  %p818_p12 = scmp.lt.s32.totalorder %s62_s24, %s62_s24 }
  0x1d   :  { %p814_p11 = scmp.ne.s32.totalorder %s62_s24, %s813_s1  ;;  %p819_p13 = scmp.lt.s32.totalorder %s813_s1, %s813_s1 }
  0x1f   :  { %p820_p0 = por %p819_p13, %p818_p12 }
  0x21   :  { %p821_p1 = pnand %p820_p0, %p814_p11 }
  0x23   :  { %824 = shalt.err (!%p821_p1)
}
  0x24   :  { %67 = dma.hbm_to_vmem [thread:$0]  %s1122_s5, 1024, %s62_s24, [#allocation9], %s922_s19, %s922_s19, %s923_s20  }
  0x25   :  { %s825_s17 = scalar_lea.hbm %s1117_s0, 128 }
  0x26   :  { %p826_p2 = scmp.ne.s32.totalorder %s1117_s0, %s825_s17  ;;  %p829_p3 = scmp.lt.u32.totalorder %s825_s17, %s1117_s0 }
  0x28   :  { %p831_p4 = pnand %p829_p3, %p826_p2 }
  0x2a   :  { %834 = shalt.err (!%p831_p4)
}
  0x2b   :  { %s835_s25 = scalar_lea.vmem %s25_s26, 128  ;;  %p840_p6 = scmp.lt.s32.totalorder %s25_s26, %s25_s26 }
  0x2c   :  { %p836_p5 = scmp.ne.s32.totalorder %s25_s26, %s835_s25  ;;  %p841_p7 = scmp.lt.s32.totalorder %s835_s25, %s835_s25 }
  0x2e   :  { %p842_p8 = por %p841_p7, %p840_p6 }
  0x30   :  { %p843_p9 = pnand %p842_p8, %p836_p5 }
  0x32   :  { %846 = shalt.err (!%p843_p9)
}
  0x33   :  { %27 = dma.hbm_to_vmem [thread:$0]  %s1117_s0, 128, %s25_s26, [#allocation3]  }
  0x34   :  { %s926_s27 = smov [#allocation7]   ;;  %s927_s29 = smov [#allocation10]  }
  0x35   :  { %s47_s28 = sshll.u32 %s926_s27, 4  ;;  %s75_s30 = sshll.u32 %s927_s29, 4  ;;  %s48_s28 = int_to_ptr.vmem [resolvable:$true] %s47_s28  ;;  %s76_s30 = int_to_ptr.vmem [resolvable:$true] %s75_s30 }
  0x36   :  { %s847_s13 = scalar_lea.hbm %s1120_s3, 1024 }
  0x37   :  { %p848_p10 = scmp.ne.s32.totalorder %s1120_s3, %s847_s13  ;;  %p851_p11 = scmp.lt.u32.totalorder %s847_s13, %s1120_s3 }
  0x39   :  { %p853_p12 = pnand %p851_p11, %p848_p10 }
  0x3b   :  { %856 = shalt.err (!%p853_p12)
}
  0x3c   :  { %s857_s0 = scalar_lea.vmem %s48_s28, 1024  ;;  %p862_p0 = scmp.lt.s32.totalorder %s48_s28, %s48_s28 }
  0x3d   :  { %p858_p13 = scmp.ne.s32.totalorder %s48_s28, %s857_s0  ;;  %p863_p1 = scmp.lt.s32.totalorder %s857_s0, %s857_s0 }
  0x3f   :  { %p864_p2 = por %p863_p1, %p862_p0 }
  0x41   :  { %p865_p3 = pnand %p864_p2, %p858_p13 }
  0x43   :  { %868 = shalt.err (!%p865_p3)
}
  0x44   :  { %53 = dma.hbm_to_vmem [thread:$0]  %s1120_s3, 1024, %s48_s28, [#allocation6], %s922_s19, %s922_s19, %s923_s20  }
  0x45   :  { %s869_s21 = scalar_lea.hbm %s1124_s7, 1024 }
  0x46   :  { %p870_p4 = scmp.ne.s32.totalorder %s1124_s7, %s869_s21  ;;  %p873_p5 = scmp.lt.u32.totalorder %s869_s21, %s1124_s7 }
  0x48   :  { %p875_p6 = pnand %p873_p5, %p870_p4 }
  0x4a   :  { %878 = shalt.err (!%p875_p6)
}
  0x4b   :  { %s879_s24 = scalar_lea.vmem %s76_s30, 1024  ;;  %p884_p8 = scmp.lt.s32.totalorder %s76_s30, %s76_s30 }
  0x4c   :  { %p880_p7 = scmp.ne.s32.totalorder %s76_s30, %s879_s24  ;;  %p885_p9 = scmp.lt.s32.totalorder %s879_s24, %s879_s24 }
  0x4e   :  { %p886_p10 = por %p885_p9, %p884_p8 }
  0x50   :  { %p887_p11 = pnand %p886_p10, %p880_p7 }
  0x52   :  { %890 = shalt.err (!%p887_p11)
}
  0x53   :  { %81 = dma.hbm_to_vmem [thread:$0]  %s1124_s7, 1024, %s76_s30, [#allocation9], %s922_s19, %s922_s19, %s923_s20  }
  0x54   :  { %913 = dma.done.wait [#allocation3], 128  }
  0x55   :  { %914 = vsyncadd [#allocation3], 4294967168 }
  0x56   :  { %915 = dma.done.wait [#allocation6], 2048  }
  0x57   :  { %916 = vsyncadd [#allocation6], 4294965248 }
  0x58   :  { %917 = dma.done.wait [#allocation9], 2048  }
  0x59   :  { %918 = vsyncadd [#allocation9], 4294965248  ;;  %v928_v0 = vmov 0.0   ;;  %vm929_vm0 = vmmov 0   ;;  %v745_v1 = vld [vmem:[#allocation5] sm:$0xff]   ;;  %v746_v2 = vld [vmem:[#allocation5 + $0x8] sm:$0xff]   ;;  %v552_v59 = vlaneseq }
  0x5a   :  { %655 = vmatprep.subr.bf16.mxu0 %v928_v0  ;;  %671 = vmatprep.mubr.msk.bf16.mxu0 %vm929_vm0, %v928_v0  ;;  %v747_v3 = vld [vmem:[#allocation5 + $0x10] sm:$0xff]   ;;  %v753_v4 = vld [vmem:[#allocation7] sm:$0xff]   ;;  %v748_v5 = vld [vmem:[#allocation5 + $0x18] sm:$0xff]  }
  0x5b   :  { %675 = vmatprep.subr.bf16.mxu1 %v928_v0  ;;  %691 = vmatprep.mubr.msk.bf16.mxu1 %vm929_vm0, %v928_v0  ;;  %v754_v6 = vld [vmem:[#allocation7 + $0x8] sm:$0xff]   ;;  %v749_v7 = vld [vmem:[#allocation5 + $0x20] sm:$0xff]   ;;  %v755_v8 = vld [vmem:[#allocation7 + $0x10] sm:$0xff]   ;;  %v553_v60 = vand.u32 127, %v552_v59 }
  0x5c   :  { %656 = vmatpush3.bf16.msra.mxu0 %v745_v1  ;;  %676 = vmatpush3.bf16.msra.mxu1 %v753_v4  ;;  %v750_v9 = vld [vmem:[#allocation5 + $0x28] sm:$0xff]   ;;  %v756_v10 = vld [vmem:[#allocation7 + $0x18] sm:$0xff]   ;;  %v751_v11 = vld [vmem:[#allocation5 + $0x30] sm:$0xff]  }
  0x5d   :  { %657 = vmatprep.subr.bf16.mxu0 %v928_v0  ;;  %677 = vmatprep.subr.bf16.mxu1 %v928_v0  ;;  %v757_v12 = vld [vmem:[#allocation7 + $0x20] sm:$0xff]   ;;  %v752_v13 = vld [vmem:[#allocation5 + $0x38] sm:$0xff]   ;;  %v758_v15 = vld [vmem:[#allocation7 + $0x28] sm:$0xff]   ;;  %vm554_vm1 = vcmp.lt.s32.totalorder %v553_v60, 4 }
  0x5e   :  { %v100_v14 = vld [vmem:[#allocation2] sm:$0xff]  ;;  %v759_v17 = vld [vmem:[#allocation7 + $0x30] sm:$0xff]   ;;  %v761_v19 = vld [vmem:[#allocation8] sm:$0xff]  }
  0x5f   :  { %v118_v16 = vpack.c.bf16 %v100_v14, %v100_v14  ;;  %v760_v18 = vld [vmem:[#allocation7 + $0x38] sm:$0xff]   ;;  %v762_v20 = vld [vmem:[#allocation8 + $0x8] sm:$0xff]   ;;  %v763_v21 = vld [vmem:[#allocation8 + $0x10] sm:$0xff]  }
  0x60   :  { %658 = vmatpush3.bf16.msra.mxu0 %v746_v2  ;;  %678 = vmatpush3.bf16.msra.mxu1 %v754_v6  ;;  %v764_v22 = vld [vmem:[#allocation8 + $0x18] sm:$0xff]   ;;  %v765_v23 = vld [vmem:[#allocation8 + $0x20] sm:$0xff]   ;;  %v766_v24 = vld [vmem:[#allocation8 + $0x28] sm:$0xff]  }
  0x61   :  { %659 = vmatprep.subr.bf16.mxu0 %v928_v0  ;;  %679 = vmatprep.subr.bf16.mxu1 %v928_v0  ;;  %v583_v25 = vld [vmem:[%s1119_s2] ss:$0 sm:$0xff]  ;;  %v767_v33 = vld [vmem:[#allocation8 + $0x30] sm:$0xff]   ;;  %v769_v35 = vld [vmem:[#allocation10] sm:$0xff]  }
  0x62   :  { %v768_v34 = vld [vmem:[#allocation8 + $0x38] sm:$0xff]   ;;  %v770_v36 = vld [vmem:[#allocation10 + $0x8] sm:$0xff]   ;;  %v771_v37 = vld [vmem:[#allocation10 + $0x10] sm:$0xff]  }
  0x63   :  { %v772_v38 = vld [vmem:[#allocation10 + $0x18] sm:$0xff]   ;;  %v773_v39 = vld [vmem:[#allocation10 + $0x20] sm:$0xff]   ;;  %v774_v40 = vld [vmem:[#allocation10 + $0x28] sm:$0xff]  }
  0x64   :  { %660 = vmatpush3.bf16.msra.mxu0 %v747_v3  ;;  %680 = vmatpush3.bf16.msra.mxu1 %v755_v8  ;;  %v592_v41 = vld [vmem:[%s1121_s4] ss:$0 sm:$0xff]  ;;  %v775_v49 = vld [vmem:[#allocation10 + $0x30] sm:$0xff]  }
  0x65   :  { %661 = vmatprep.subr.bf16.mxu0 %v928_v0  ;;  %681 = vmatprep.subr.bf16.mxu1 %v928_v0  ;;  %v776_v50 = vld [vmem:[#allocation10 + $0x38] sm:$0xff]  }
  0x66   :  { %v601_v51 = vld [vmem:[%s1123_s6] ss:$0 sm:$0xff]  ;;  %s930_s6 = smov [#allocation11]  }
  0x67   :  { %v610_v61 = vld [vmem:[%s1125_s8] ss:$0 sm:$0xff]  ;;  %s572_s11 = sshll.u32 %s930_s6, 4  ;;  %s573_s11 = int_to_ptr.vmem [resolvable:$true] %s572_s11 }
  0x68   :  { %662 = vmatpush3.bf16.msra.mxu0 %v748_v5  ;;  %682 = vmatpush3.bf16.msra.mxu1 %v756_v10  ;;  %s891_s8 = scalar_lea.vmem %s573_s11, 128  ;;  %p896_p13 = scmp.lt.s32.totalorder %s573_s11, %s573_s11 }
  0x69   :  { %663 = vmatprep.subr.bf16.mxu0 %v928_v0  ;;  %683 = vmatprep.subr.bf16.mxu1 %v928_v0  ;;  %p892_p12 = scmp.ne.s32.totalorder %s573_s11, %s891_s8  ;;  %p897_p0 = scmp.lt.s32.totalorder %s891_s8, %s891_s8 }
  0x6b   :  { %p898_p1 = por %p897_p0, %p896_p13 }
  0x6c   :  { %664 = vmatpush3.bf16.msra.mxu0 %v749_v7  ;;  %684 = vmatpush3.bf16.msra.mxu1 %v757_v12 }
  0x6d   :  { %665 = vmatprep.subr.bf16.mxu0 %v928_v0  ;;  %685 = vmatprep.subr.bf16.mxu1 %v928_v0  ;;  %p899_p2 = pnand %p898_p1, %p892_p12 }
  0x70   :  { %666 = vmatpush3.bf16.msra.mxu0 %v750_v9  ;;  %686 = vmatpush3.bf16.msra.mxu1 %v758_v15 }
  0x71   :  { %667 = vmatprep.subr.bf16.mxu0 %v928_v0  ;;  %687 = vmatprep.subr.bf16.mxu1 %v928_v0 }
  0x74   :  { %668 = vmatpush3.bf16.msra.mxu0 %v751_v11  ;;  %688 = vmatpush3.bf16.msra.mxu1 %v759_v17 }
  0x75   :  { %669 = vmatprep.subr.bf16.mxu0 %v928_v0  ;;  %689 = vmatprep.subr.bf16.mxu1 %v928_v0 }
  0x78   :  { %670 = vmatpush3.bf16.msra.mxu0 %v752_v13  ;;  %690 = vmatpush3.bf16.msra.mxu1 %v760_v18 }
  0x79   :  { %695 = vmatprep.subr.bf16.mxu0 %v928_v0  ;;  %715 = vmatprep.subr.bf16.mxu1 %v928_v0 }
  0x7b   :  { %672 = vmatmul.mubr.bf16.vlgmr.msra.gmra.mrb[0].mxu0 %v118_v16 }
  0x7c   :  { %711 = vmatprep.mubr.msk.bf16.mxu0 %vm929_vm0, %v928_v0  ;;  %696 = vmatpush3.bf16.msra.mxu0 %v761_v19 }
  0x7d   :  { %697 = vmatprep.subr.bf16.mxu0 %v928_v0 }
  0x80   :  { %698 = vmatpush3.bf16.msra.mxu0 %v762_v20 }
  0x81   :  { %699 = vmatprep.subr.bf16.mxu0 %v928_v0 }
  0x84   :  { %700 = vmatpush3.bf16.msra.mxu0 %v763_v21 }
  0x85   :  { %701 = vmatprep.subr.bf16.mxu0 %v928_v0 }
  0x88   :  { %702 = vmatpush3.bf16.msra.mxu0 %v764_v22 }
  0x89   :  { %703 = vmatprep.subr.bf16.mxu0 %v928_v0 }
  0x8c   :  { %704 = vmatpush3.bf16.msra.mxu0 %v765_v23 }
  0x8d   :  { %705 = vmatprep.subr.bf16.mxu0 %v928_v0 }
  0x90   :  { %706 = vmatpush3.bf16.msra.mxu0 %v766_v24 }
  0x91   :  { %707 = vmatprep.subr.bf16.mxu0 %v928_v0 }
  0x94   :  { %708 = vmatpush3.bf16.msra.mxu0 %v767_v33 }
  0x95   :  { %709 = vmatprep.subr.bf16.mxu0 %v928_v0 }
  0x98   :  { %710 = vmatpush3.bf16.msra.mxu0 %v768_v34 }
 0x14e   :  { %v207_v26 = vpop.f32.mrb[0].mxu0 }
 0x14f   :  { %v208_v27 = vadd.f32 %v583_v25, %v207_v26  ;;  %v673_v28 = vpop.f32.mrb[1].mxu0 }
 0x150   :  { %v210_v29 = vpop.f32.mrb[2].mxu0 }
 0x151   :  { %v213_v30 = vmax.f32 %v208_v27, 0.0  ;;  %v674_v31 = vpop.f32.mrb[3].mxu0 }
 0x153   :  { %v231_v32 = vpack.c.bf16 %v213_v30, %v213_v30 }
 0x155   :  { %692 = vmatmul.mubr.bf16.vlgmr.msra.gmra.mrb[0].mxu1 %v231_v32 }
 0x156   :  { %731 = vmatprep.mubr.msk.bf16.mxu1 %vm929_vm0, %v928_v0  ;;  %716 = vmatpush3.bf16.msra.mxu1 %v769_v35 }
 0x157   :  { %717 = vmatprep.subr.bf16.mxu1 %v928_v0 }
 0x15a   :  { %718 = vmatpush3.bf16.msra.mxu1 %v770_v36 }
 0x15b   :  { %719 = vmatprep.subr.bf16.mxu1 %v928_v0 }
 0x15e   :  { %720 = vmatpush3.bf16.msra.mxu1 %v771_v37 }
 0x15f   :  { %721 = vmatprep.subr.bf16.mxu1 %v928_v0 }
 0x162   :  { %722 = vmatpush3.bf16.msra.mxu1 %v772_v38 }
 0x163   :  { %723 = vmatprep.subr.bf16.mxu1 %v928_v0 }
 0x166   :  { %724 = vmatpush3.bf16.msra.mxu1 %v773_v39 }
 0x167   :  { %725 = vmatprep.subr.bf16.mxu1 %v928_v0 }
 0x16a   :  { %726 = vmatpush3.bf16.msra.mxu1 %v774_v40 }
 0x16b   :  { %727 = vmatprep.subr.bf16.mxu1 %v928_v0 }
 0x16e   :  { %728 = vmatpush3.bf16.msra.mxu1 %v775_v49 }
 0x16f   :  { %729 = vmatprep.subr.bf16.mxu1 %v928_v0 }
 0x172   :  { %730 = vmatpush3.bf16.msra.mxu1 %v776_v50 }
 0x228   :  { %v320_v42 = vpop.f32.mrb[0].mxu1 }
 0x229   :  { %v321_v43 = vadd.f32 %v592_v41, %v320_v42  ;;  %v693_v44 = vpop.f32.mrb[1].mxu1 }
 0x22a   :  { %v323_v45 = vpop.f32.mrb[2].mxu1 }
 0x22b   :  { %v326_v46 = vmax.f32 %v321_v43, 0.0  ;;  %v694_v47 = vpop.f32.mrb[3].mxu1 }
 0x22d   :  { %v344_v48 = vpack.c.bf16 %v326_v46, %v326_v46 }
 0x22f   :  { %712 = vmatmul.mubr.bf16.vlgmr.msra.gmra.mrb[4].mxu0 %v344_v48 }
 0x302   :  { %v433_v52 = vpop.f32.mrb[4].mxu0 }
 0x303   :  { %v434_v53 = vadd.f32 %v601_v51, %v433_v52  ;;  %v713_v54 = vpop.f32.mrb[5].mxu0 }
 0x304   :  { %v436_v55 = vpop.f32.mrb[6].mxu0 }
 0x305   :  { %v439_v56 = vmax.f32 %v434_v53, 0.0  ;;  %v714_v57 = vpop.f32.mrb[7].mxu0 }
 0x307   :  { %v457_v58 = vpack.c.bf16 %v439_v56, %v439_v56 }
 0x309   :  { %732 = vmatmul.mubr.bf16.vlgmr.msra.gmra.mrb[4].mxu1 %v457_v58 }
 0x3dc   :  { %v546_v62 = vpop.f32.mrb[4].mxu1 }
 0x3dd   :  { %v547_v63 = vadd.f32 %v610_v61, %v546_v62  ;;  %v733_v0 = vpop.f32.mrb[5].mxu1 }
 0x3de   :  { %v549_v1 = vpop.f32.mrb[6].mxu1 }
 0x3df   :  { %v734_v2 = vpop.f32.mrb[7].mxu1  ;;  %v555_v3 = vsel %vm554_vm1, %v547_v63, -inf }
 0x3e0   :  { %556 = vmax.xlane.f32.xlu0 %v555_v3 }
 0x46d   :  { %v557_v4 = vpop.xlane.xlu0 %556 }
 0x46e   :  { %v558_v5 = vsub.f32 %v555_v3, %v557_v4 }
 0x470   :  { %v559_v6 = vmul.f32 1.442695, %v558_v5 }
 0x472   :  { %777 = vpow2.f32 %v559_v6 }
 0x47c   :  { %v778_v7 = vpop.eup %777 }
 0x47d   :  { %561 = vadd.xlane.f32.xlu0 %v778_v7 }
 0x50a   :  { %v562_v8 = vpop.xlane.xlu0 %561 }
 0x50b   :  { %779 = vrcp.f32 %v562_v8 }
 0x515   :  { %v780_v9 = vpop.eup %779 }
 0x516   :  { %v564_v10 = vmul.f32 %v780_v9, %v778_v7 }
 0x518   :  { %565 = vst [vmem:[#allocation11] sm:$0xff] %v564_v10 }
 0x519   :  { %902 = shalt.err (!%p899_p2)
}
 0x51a   :  { %s903_s1 = scalar_lea.hbm %s1126_s9, 128 }
 0x51b   :  { %p904_p3 = scmp.ne.s32.totalorder %s1126_s9, %s903_s1  ;;  %p907_p4 = scmp.lt.u32.totalorder %s903_s1, %s1126_s9 }
 0x51d   :  { %p909_p5 = pnand %p907_p4, %p904_p3 }
 0x51f   :  { %912 = shalt.err (!%p909_p5)
}
 0x520   :  { %575 = dma.vmem_to_hbm [thread:$0]  %s573_s11, 128, %s1126_s9, [#allocation4]  }
 0x521   :  { %919 = dma.done.wait [#allocation4], 128  }
 0x522   :  { %920 = vsyncadd [#allocation4], 4294967168 }
 0x523   :  { %579 = vsyncpa [#allocation3], 1 }
 0x524   :  { %580 = vsyncpa [#allocation6], 1 }
 0x525   :  { %581 = vsyncpa [#allocation9], 1 }
 0x526   :  { %582 = vsyncpa [#allocation4], 1 }

</bundles_post_ra>
